<compile_context>
chip_gen: v5e
topology: v5e:2x2
jax: 0.10.0
libtpu: 0.0.40
codegen_flags: <defaults>
</compile_context>

<pallas_src>
import numpy as np
import jax
import jax.numpy as jnp
from jax.experimental import pallas as pl
from jax.experimental.pallas import tpu as pltpu

KS = 11          # kernel_size
SIGMA = 1.5
PAD = KS // 2    # padding = kernel_size // 2  (same-size output)
C1 = 0.01 ** 2
C2 = 0.03 ** 2


def _gaussian_1d(kernel_size: int, sigma: float) -> np.ndarray:
    # Mirrors SSIMLoss._create_gaussian_kernel (kernel_2d = outer(k1d, k1d)).
    start = (1 - kernel_size) / 2
    end = (1 + kernel_size) / 2
    k1d = np.arange(start, end, 1.0, dtype=np.float64)
    k1d = np.exp(-np.power(k1d / sigma, 2) / 2)
    return (k1d / k1d.sum()).astype(np.float32)


K1D = _gaussian_1d(KS, SIGMA)


def _band_matrix(n: int) -> np.ndarray:
    """(n, n) banded gaussian blur matrix with zero 'same' padding baked in.

    B[i, j] = k1d[j - i + PAD] for |j - i| <= PAD (else 0), so that
    (B @ x)[i] == 1-D conv of x with k1d and zero padding PAD.  The matrix is
    symmetric, so the 2-D separable blur is  blur(P) = B_rows @ P @ B_cols.
    """
    b = np.zeros((n, n), dtype=np.float32)
    for d in range(-PAD, PAD + 1):
        v = K1D[d + PAD]
        idx = np.arange(max(0, -d), min(n, n - d))
        b[idx, idx + d] = v
    return b


def _ssim_plane(x, y, bv, bw):
    """SSIM map for one (H, W) plane pair; blur runs on the MXU, f32 accum."""

    def blur(p):
        t = jnp.dot(bv, p, preferred_element_type=jnp.float32)   # vertical pass
        return jnp.dot(t, bw, preferred_element_type=jnp.float32)  # horizontal pass

    ux = blur(x)
    uy = blur(y)
    # Consume each second-moment blur immediately to keep the live set small.
    vx = blur(x * x) - ux * ux
    vy = blur(y * y) - uy * uy
    vxy = blur(x * y) - ux * uy

    num = (2.0 * ux * uy + C1) * (2.0 * vxy + C2)
    den = (ux * ux + uy * uy + C1) * (vx + vy + C2)
    # Exact division (matches the PyTorch reference incl. the +1e-12 term).
    return num / (den + 1e-12)


def _ssim_map_kernel(x_ref, y_ref, bv_ref, bw_ref, map_ref):
    """One grid step = one (n*c) plane; writes the SSIM map tile."""
    ssim = _ssim_plane(x_ref[0], y_ref[0], bv_ref[...], bw_ref[...])
    map_ref[0] = ssim.astype(map_ref.dtype)


def _ssim_sum_kernel(x_ref, y_ref, bv_ref, bw_ref, sum_ref):
    """Loss-only variant: emits one partial sum per plane (no map writeback)."""
    ssim = _ssim_plane(x_ref[0], y_ref[0], bv_ref[...], bw_ref[...])
    sum_ref[0] = jnp.sum(ssim, keepdims=True)   # (1, 1) into the (1,1,1) block


def ssim_forward(x, y, as_loss: bool = True):
    """Equivalent of SSIMLoss.forward. x, y: (N, 3, H, W) float arrays."""
    N, C, H, W = x.shape
    NC = N * C

    xr = jnp.reshape(x.astype(jnp.float32), (NC, H, W))
    yr = jnp.reshape(y.astype(jnp.float32), (NC, H, W))
    bv = jnp.asarray(_band_matrix(H))   # (H, H), resident across the grid
    bw = jnp.asarray(_band_matrix(W))   # (W, W), resident across the grid

    in_specs = [
        pl.BlockSpec((1, H, W), lambda i: (i, 0, 0)),
        pl.BlockSpec((1, H, W), lambda i: (i, 0, 0)),
        pl.BlockSpec((H, H), lambda i: (0, 0)),
        pl.BlockSpec((W, W), lambda i: (0, 0)),
    ]
    compiler_params = pltpu.CompilerParams(
        dimension_semantics=("parallel",),          # per-plane outputs -> safe
        vmem_limit_bytes=64 * 1024 * 1024,
    )

    if as_loss:
        partial = pl.pallas_call(
            _ssim_sum_kernel,
            out_shape=jax.ShapeDtypeStruct((NC, 1, 1), jnp.float32),
            grid=(NC,),
            in_specs=in_specs,
            out_specs=pl.BlockSpec((1, 1, 1), lambda i: (i, 0, 0)),
            compiler_params=compiler_params,
        )(xr, yr, bv, bw)
        return 1.0 - jnp.sum(partial) / (N * C * H * W)

    ssim_map = pl.pallas_call(
        _ssim_map_kernel,
        out_shape=jax.ShapeDtypeStruct((NC, H, W), jnp.float32),
        grid=(NC,),
        in_specs=in_specs,
        out_specs=pl.BlockSpec((1, H, W), lambda i: (i, 0, 0)),
        compiler_params=compiler_params,
    )(xr, yr, bv, bw)
    return jnp.reshape(ssim_map, (N, C, H, W))


if __name__ == "__main__":
    key = jax.random.PRNGKey(0)
    kx, ky = jax.random.split(key)
    N, C, H, W = 2, 3, 16, 16
    x = jax.random.uniform(kx, (N, C, H, W), dtype=jnp.float32)
    y = jax.random.uniform(ky, (N, C, H, W), dtype=jnp.float32)

    loss_fn = jax.jit(lambda a, b: ssim_forward(a, b, as_loss=True))
    map_fn = jax.jit(lambda a, b: ssim_forward(a, b, as_loss=False))

    loss = jax.block_until_ready(loss_fn(x, y))
    ssim_map = jax.block_until_ready(map_fn(x, y))

    # Independent float64 reference: direct padded 11x11 depthwise conv.
    def _conv_ref(p, k2d):
        Hh, Ww = p.shape
        pp = np.pad(p, PAD)
        out = np.zeros((Hh, Ww), dtype=np.float64)
        for a in range(KS):
            for b in range(KS):
                out += k2d[a, b] * pp[a:a + Hh, b:b + Ww]
        return out

    k2d = np.outer(K1D, K1D).astype(np.float64)
    xn = np.asarray(x, dtype=np.float64)
    yn = np.asarray(y, dtype=np.float64)
    ref_map = np.zeros((N, C, H, W), dtype=np.float64)
    for n in range(N):
        for c in range(C):
            xp_, yp_ = xn[n, c], yn[n, c]
            ux = _conv_ref(xp_, k2d)
            uy = _conv_ref(yp_, k2d)
            vx = _conv_ref(xp_ * xp_, k2d) - ux * ux
            vy = _conv_ref(yp_ * yp_, k2d) - uy * uy
            vxy = _conv_ref(xp_ * yp_, k2d) - ux * uy
            num = (2 * ux * uy + C1) * (2 * vxy + C2)
            den = (ux * ux + uy * uy + C1) * (vx + vy + C2)
            ref_map[n, c] = num / (den + 1e-12)
    ref_loss = 1.0 - ref_map.mean()

    np.testing.assert_allclose(np.asarray(ssim_map), ref_map, rtol=1e-2, atol=1e-2)
    assert abs(float(loss) - float(ref_loss)) < 1e-2, (float(loss), float(ref_loss))

    # SSIM of an image with itself is ~1 everywhere -> loss ~0.
    loss_self = jax.block_until_ready(loss_fn(x, x))
    assert abs(float(loss_self)) < 1e-3, float(loss_self)
    assert ssim_map.shape == (N, C, H, W)
    assert jnp.isfinite(loss)

    print("KERNEL_OK")
</pallas_src>

<mosaic_0001>
module attributes {stable_mosaic.version = 11 : i64} {
  func.func @_ssim_sum_kernel(%arg0: i32, %arg1: memref<1x16x16xf32, #tpu.memory_space<vmem>>, %arg2: memref<1x16x16xf32, #tpu.memory_space<vmem>>, %arg3: memref<16x16xf32, #tpu.memory_space<vmem>>, %arg4: memref<16x16xf32, #tpu.memory_space<vmem>>, %arg5: memref<1x1x1xf32, #tpu.memory_space<vmem>>) attributes {dimension_semantics = [#tpu.dimension_semantics<parallel>], iteration_bounds = array<i64: 6>, scalar_prefetch = 0 : i64, scratch_operands = 0 : i64, tpu.core_type = #tpu.core_type<tc>, window_params = [{transform_indices = @transform_0, window_bounds = array<i64: 1, 16, 16>}, {transform_indices = @transform_1, window_bounds = array<i64: 1, 16, 16>}, {pipeline_mode = #tpu.pipeline_mode<synchronous>, transform_indices = @transform_2, window_bounds = array<i64: 16, 16>}, {pipeline_mode = #tpu.pipeline_mode<synchronous>, transform_indices = @transform_3, window_bounds = array<i64: 16, 16>}, {transform_indices = @transform_4, window_bounds = array<i64: 1, 1, 1>}]} {
    %c0 = arith.constant 0 : index
    %c0_0 = arith.constant 0 : index
    %c0_1 = arith.constant 0 : index
    %0 = vector.load %arg1[%c0, %c0_0, %c0_1] : memref<1x16x16xf32, #tpu.memory_space<vmem>>, vector<1x16x16xf32>
    %1 = vector.shape_cast %0 : vector<1x16x16xf32> to vector<16x16xf32>
    %c0_2 = arith.constant 0 : index
    %c0_3 = arith.constant 0 : index
    %c0_4 = arith.constant 0 : index
    %2 = vector.load %arg2[%c0_2, %c0_3, %c0_4] : memref<1x16x16xf32, #tpu.memory_space<vmem>>, vector<1x16x16xf32>
    %3 = vector.shape_cast %2 : vector<1x16x16xf32> to vector<16x16xf32>
    %c0_5 = arith.constant 0 : index
    %c0_6 = arith.constant 0 : index
    %4 = vector.load %arg3[%c0_5, %c0_6] : memref<16x16xf32, #tpu.memory_space<vmem>>, vector<16x16xf32>
    %c0_7 = arith.constant 0 : index
    %c0_8 = arith.constant 0 : index
    %5 = vector.load %arg4[%c0_7, %c0_8] : memref<16x16xf32, #tpu.memory_space<vmem>>, vector<16x16xf32>
    %cst = arith.constant dense<0.000000e+00> : vector<16x16xf32>
    %6 = tpu.matmul %4, %1, %cst {dimension_numbers = #tpu.dot_dimension_numbers<[1], [0], [0], [1], [0, 0, 1, 1], [], []>} : vector<16x16xf32>, vector<16x16xf32>, vector<16x16xf32> -> vector<16x16xf32>
    %cst_9 = arith.constant dense<0.000000e+00> : vector<16x16xf32>
    %7 = tpu.matmul %6, %5, %cst_9 {dimension_numbers = #tpu.dot_dimension_numbers<[1], [0], [0], [1], [0, 0, 1, 1], [], []>} : vector<16x16xf32>, vector<16x16xf32>, vector<16x16xf32> -> vector<16x16xf32>
    %cst_10 = arith.constant dense<0.000000e+00> : vector<16x16xf32>
    %8 = tpu.matmul %4, %3, %cst_10 {dimension_numbers = #tpu.dot_dimension_numbers<[1], [0], [0], [1], [0, 0, 1, 1], [], []>} : vector<16x16xf32>, vector<16x16xf32>, vector<16x16xf32> -> vector<16x16xf32>
    %cst_11 = arith.constant dense<0.000000e+00> : vector<16x16xf32>
    %9 = tpu.matmul %8, %5, %cst_11 {dimension_numbers = #tpu.dot_dimension_numbers<[1], [0], [0], [1], [0, 0, 1, 1], [], []>} : vector<16x16xf32>, vector<16x16xf32>, vector<16x16xf32> -> vector<16x16xf32>
    %10 = arith.mulf %1, %1 : vector<16x16xf32>
    %cst_12 = arith.constant dense<0.000000e+00> : vector<16x16xf32>
    %11 = tpu.matmul %4, %10, %cst_12 {dimension_numbers = #tpu.dot_dimension_numbers<[1], [0], [0], [1], [0, 0, 1, 1], [], []>} : vector<16x16xf32>, vector<16x16xf32>, vector<16x16xf32> -> vector<16x16xf32>
    %cst_13 = arith.constant dense<0.000000e+00> : vector<16x16xf32>
    %12 = tpu.matmul %11, %5, %cst_13 {dimension_numbers = #tpu.dot_dimension_numbers<[1], [0], [0], [1], [0, 0, 1, 1], [], []>} : vector<16x16xf32>, vector<16x16xf32>, vector<16x16xf32> -> vector<16x16xf32>
    %13 = arith.mulf %7, %7 : vector<16x16xf32>
    %14 = arith.subf %12, %13 : vector<16x16xf32>
    %15 = arith.mulf %3, %3 : vector<16x16xf32>
    %cst_14 = arith.constant dense<0.000000e+00> : vector<16x16xf32>
    %16 = tpu.matmul %4, %15, %cst_14 {dimension_numbers = #tpu.dot_dimension_numbers<[1], [0], [0], [1], [0, 0, 1, 1], [], []>} : vector<16x16xf32>, vector<16x16xf32>, vector<16x16xf32> -> vector<16x16xf32>
    %cst_15 = arith.constant dense<0.000000e+00> : vector<16x16xf32>
    %17 = tpu.matmul %16, %5, %cst_15 {dimension_numbers = #tpu.dot_dimension_numbers<[1], [0], [0], [1], [0, 0, 1, 1], [], []>} : vector<16x16xf32>, vector<16x16xf32>, vector<16x16xf32> -> vector<16x16xf32>
    %18 = arith.mulf %9, %9 : vector<16x16xf32>
    %19 = arith.subf %17, %18 : vector<16x16xf32>
    %20 = arith.mulf %1, %3 : vector<16x16xf32>
    %cst_16 = arith.constant dense<0.000000e+00> : vector<16x16xf32>
    %21 = tpu.matmul %4, %20, %cst_16 {dimension_numbers = #tpu.dot_dimension_numbers<[1], [0], [0], [1], [0, 0, 1, 1], [], []>} : vector<16x16xf32>, vector<16x16xf32>, vector<16x16xf32> -> vector<16x16xf32>
    %cst_17 = arith.constant dense<0.000000e+00> : vector<16x16xf32>
    %22 = tpu.matmul %21, %5, %cst_17 {dimension_numbers = #tpu.dot_dimension_numbers<[1], [0], [0], [1], [0, 0, 1, 1], [], []>} : vector<16x16xf32>, vector<16x16xf32>, vector<16x16xf32> -> vector<16x16xf32>
    %23 = arith.mulf %7, %9 : vector<16x16xf32>
    %24 = arith.subf %22, %23 : vector<16x16xf32>
    %cst_18 = arith.constant 2.000000e+00 : f32
    %25 = vector.broadcast %cst_18 : f32 to vector<16x16xf32>
    %26 = arith.mulf %25, %7 : vector<16x16xf32>
    %27 = arith.mulf %26, %9 : vector<16x16xf32>
    %cst_19 = arith.constant 9.99999974E-5 : f32
    %28 = vector.broadcast %cst_19 : f32 to vector<16x16xf32>
    %29 = arith.addf %27, %28 : vector<16x16xf32>
    %cst_20 = arith.constant 2.000000e+00 : f32
    %30 = vector.broadcast %cst_20 : f32 to vector<16x16xf32>
    %31 = arith.mulf %30, %24 : vector<16x16xf32>
    %cst_21 = arith.constant 8.99999984E-4 : f32
    %32 = vector.broadcast %cst_21 : f32 to vector<16x16xf32>
    %33 = arith.addf %31, %32 : vector<16x16xf32>
    %34 = arith.mulf %29, %33 : vector<16x16xf32>
    %35 = arith.mulf %7, %7 : vector<16x16xf32>
    %36 = arith.mulf %9, %9 : vector<16x16xf32>
    %37 = arith.addf %35, %36 : vector<16x16xf32>
    %cst_22 = arith.constant 9.99999974E-5 : f32
    %38 = vector.broadcast %cst_22 : f32 to vector<16x16xf32>
    %39 = arith.addf %37, %38 : vector<16x16xf32>
    %40 = arith.addf %14, %19 : vector<16x16xf32>
    %cst_23 = arith.constant 8.99999984E-4 : f32
    %41 = vector.broadcast %cst_23 : f32 to vector<16x16xf32>
    %42 = arith.addf %40, %41 : vector<16x16xf32>
    %43 = arith.mulf %39, %42 : vector<16x16xf32>
    %cst_24 = arith.constant 9.99999996E-13 : f32
    %44 = vector.broadcast %cst_24 : f32 to vector<16x16xf32>
    %45 = arith.addf %43, %44 : vector<16x16xf32>
    %46 = arith.divf %34, %45 : vector<16x16xf32>
    %47 = vector.shape_cast %46 : vector<16x16xf32> to vector<1x16x16xf32>
    %cst_25 = arith.constant dense<0.000000e+00> : vector<1xf32>
    %48 = vector.multi_reduction <add>, %47, %cst_25 [1, 2] : vector<1x16x16xf32> to vector<1xf32>
    %49 = vector.shape_cast %48 : vector<1xf32> to vector<1x1x1xf32>
    %50 = vector.extract %49[0, 0, 0] : f32 from vector<1x1x1xf32>
    %51 = vector.broadcast %50 : f32 to vector<1x1xf32>
    %c0_26 = arith.constant 0 : index
    %c0_27 = arith.constant 0 : index
    %c0_28 = arith.constant 0 : index
    %52 = vector.load %arg5[%c0_26, %c0_27, %c0_28] : memref<1x1x1xf32, #tpu.memory_space<vmem>>, vector<1x1x1xf32>
    %53 = vector.shape_cast %52 : vector<1x1x1xf32> to vector<1x1xf32>
    %54 = vector.shape_cast %51 : vector<1x1xf32> to vector<1x1x1xf32>
    tpu.vector_store %arg5[%c0_26, %c0_27, %c0_28], %54 {strides = array<i32>} : memref<1x1x1xf32, #tpu.memory_space<vmem>>, vector<1x1x1xf32>,
    return
  }
  func.func @transform_0(%arg0: i32) -> (i32, i32, i32) {
    %c0_i32 = arith.constant 0 : i32
    %c0_i32_0 = arith.constant 0 : i32
    %c0_i32_1 = arith.constant 0 : i32
    return %arg0, %c0_i32, %c0_i32_0 : i32, i32, i32
  }
  func.func @transform_1(%arg0: i32) -> (i32, i32, i32) {
    %c0_i32 = arith.constant 0 : i32
    %c0_i32_0 = arith.constant 0 : i32
    %c0_i32_1 = arith.constant 0 : i32
    return %arg0, %c0_i32, %c0_i32_0 : i32, i32, i32
  }
  func.func @transform_2(%arg0: i32) -> (i32, i32) {
    %c0_i32 = arith.constant 0 : i32
    %c0_i32_0 = arith.constant 0 : i32
    %c0_i32_1 = arith.constant 0 : i32
    return %c0_i32, %c0_i32_0 : i32, i32
  }
  func.func @transform_3(%arg0: i32) -> (i32, i32) {
    %c0_i32 = arith.constant 0 : i32
    %c0_i32_0 = arith.constant 0 : i32
    %c0_i32_1 = arith.constant 0 : i32
    return %c0_i32, %c0_i32_0 : i32, i32
  }
  func.func @transform_4(%arg0: i32) -> (i32, i32, i32) {
    %c0_i32 = arith.constant 0 : i32
    %c0_i32_0 = arith.constant 0 : i32
    %c0_i32_1 = arith.constant 0 : i32
    return %arg0, %c0_i32, %c0_i32_0 : i32, i32, i32
  }
}

</mosaic_0001>

<bundles_post_ra>
// kernel: _lambda_.1
= control target key start
LH: loop header
LB: loop body
LE: loop exit
PB: predicated region body
PF: predicated region fallthrough
CT: control target
= control target key end

     0   :  { %9 = vsyncpa [#allocation3], 0  ;;  %s1242_s0 = inlined_call_operand.hbm [shape: f32[6,16,16], index: 0, kind: input, shape index: {}]   ;;  %s1243_s1 = inlined_call_operand.hbm [shape: f32[6,16,16], index: 1, kind: input, shape index: {}]   ;;  %s1244_s2 = inlined_call_operand.hbm [shape: f32[16,16], index: 2, kind: input, shape index: {}, may-alias: {2,3}]   ;;  %s1245_s3 = inlined_call_operand.hbm [shape: f32[16,16], index: 3, kind: input, shape index: {}, may-alias: {2,3}]   ;;  %s1246_s4 = inlined_call_operand.vmem [shape: f32[6,1,1], index: 4, kind: output, shape index: {}]  }
   0x1   :  { %11 = vsyncpa [#allocation3 + $0x1], 0 }
   0x2   :  { %12 = vsyncpa [#allocation5], 0 }
   0x3   :  { %14 = vsyncpa [#allocation5 + $0x1], 0 }
   0x4   :  { %15 = vsyncpa [#allocation8], 0  ;;  %s1068_s15 = smov 0   ;;  %s1070_s16 = smov 0  }
   0x5   :  { %s1072_s17 = smov 0   ;;  %s1074_s18 = smov 0  }
   0x6 LB: > { %s1087_s19 = sadd.s32 4294967295, %s1037_s18   ;;  %p41_p0 = scmp.ne.s32.totalorder %s1029_s16, %s1025_s15  ;;  %s1037_s18 = sphi %s1074_s18, %s1253_s18   ;;  %s1033_s17 = sphi %s1072_s17, %s1252_s17   ;;  %s1029_s16 = sphi %s1070_s16, %s1251_s16   ;;  %s1025_s15 = sphi %s1068_s15, %s1250_s15  }
   0x7   : > { %p42_p1 = scmp.eq.s32.totalorder %s1087_s19, 0  ;;  %p755_p2 = scmp.ge.s32.totalorder %s1037_s18, 1 }
   0x8   : > { %p146_p3 = scmp.lt.s32.totalorder %s1037_s18, 7  ;;  %s157_s23 = sshll.u32 %s1244_s2, 4  ;;  %s158_s23 = int_to_ptr.hbm [resolvable:$true] %s157_s23 }
   0x9   : > { %p1095_p4 = por %p42_p1, %p41_p0  ;;  %s1039_s25 = smov [#allocation6]  }
   0xa   : > { %p1102_p5 = pnand %p755_p2, %p146_p3  ;;  %s159_s26 = sshll.u32 %s1039_s25, 4  ;;  %s160_s26 = int_to_ptr.vmem [resolvable:$true] %s159_s26 }
   0xb   : > { %s171_s29 = sshll.u32 %s1245_s3, 4  ;;  %s1040_s30 = smov 128   ;;  %s172_s29 = int_to_ptr.hbm [resolvable:$true] %s171_s29 }
   0xc   : > { %p812_p6 = pneg %p1102_p5  ;;  %s1041_s5 = smov 8  }
   0xd   : > { %s1042_s6 = smov [#allocation7]   ;;  %s1120_s8 = sadd.s32 1, %s1037_s18  }
   0xe   : > { %p813_p7 = pnand %p812_p6, %p42_p1  ;;  %s173_s7 = sshll.u32 %s1042_s6, 4  ;;  %s174_s7 = int_to_ptr.vmem [resolvable:$true] %s173_s7 }
   0xf   : > { %s28_s9 = sadd.s32 1, %s1033_s17  ;;  %s25_s10 = ssub.s32 %s1037_s18, %s1120_s8 }
  0x10   : > { %815 = dma.hbm_to_vmem [thread:$0]  (!%p813_p7), %s158_s23, 256, %s160_s26, [#allocation5], %s1040_s30, %s1040_s30, %s1041_s5  }
  0x11   : > { %818 = dma.hbm_to_vmem [thread:$0]  (!%p813_p7), %s172_s29, 256, %s174_s7, [#allocation8], %s1040_s30, %s1040_s30, %s1041_s5  }
  0x12   : > { %p35_p8 = scmp.ne.s32.totalorder %s1033_s17, %s1029_s16  ;;  %p26_p9 = scmp.eq.s32.totalorder %s25_s10, 0 }
  0x13   : > { %p36_p10 = scmp.eq.s32.totalorder %s1037_s18, 0  ;;  %p828_p11 = scmp.lt.s32.totalorder %s1037_s18, 6 }
  0x14   : > { %s187_s11 = sand.u32 1, %s1033_s17   ;;  %s792_s14 = sshll.u32 %s1037_s18, 4 }
  0x15   : > { %s1131_s12 = scalar_select %p26_p9, %s1033_s17, %s28_s9  }
  0x16   : > { %p37_p12 = por %p36_p10, %p35_p8  ;;  %s759_s13 = sshll.u32 %s187_s11, 4 }
  0x17   : > { %s196_s22 = scalar_lea.hbm %s1242_s0, %s792_s14  ;;  %s191_s25 = scalar_lea.vmem [#allocation2], %s759_s13 }
  0x18   : > { %s197_s23 = sshll.u32 %s196_s22, 4  ;;  %s199_s26 = sshll.u32 %s191_s25, 4  ;;  %s198_s23 = int_to_ptr.hbm [resolvable:$true] %s197_s23  ;;  %s200_s26 = int_to_ptr.vmem [resolvable:$true] %s199_s26 }
  0x19   : > { %p1137_p13 = pnand %p828_p11, %p37_p12  ;;  %s218_s6 = scalar_lea.hbm %s1243_s1, %s792_s14 }
  0x1a   : > { %s213_s7 = scalar_lea.vmem [#allocation4], %s759_s13  ;;  %s219_s10 = sshll.u32 %s218_s6, 4  ;;  %s220_s10 = int_to_ptr.hbm [resolvable:$true] %s219_s10 }
  0x1b   : > { %s1144_s9 = sshll.u32 %s213_s7, 4  ;;  %s188_s15 = scalar_lea.sflag [#allocation3], %s187_s11  ;;  %s222_s9 = int_to_ptr.vmem [resolvable:$true] %s1144_s9 }
  0x1c   : > { %s931_s21 = sshra.s32 %s198_s23, 4  ;;  %p935_p2 = pneg %p1137_p13  ;;  %s932_s21 = int_to_ptr.hbm [resolvable:$true] %s931_s21 }
  0x1d   : > { %s933_s22 = scalar_lea.hbm %s932_s21, 16  ;;  %s938_s29 = scalar_lea.hbm %s1242_s0, 96 }
  0x1e   : > { %p934_p0 = scmp.ne.s32.totalorder %s932_s21, %s933_s22  ;;  %p939_p7 = scmp.lt.s32.totalorder %s932_s21, %s1242_s0 }
  0x1f   : > { %p940_p8 = scmp.lt.s32.totalorder %s938_s29, %s933_s22 }
  0x20   : > { %p936_p3 = pnand %p935_p2, %p934_p0 }
  0x21   : > { %p941_p9 = por %p940_p8, %p939_p7 }
  0x22   : > { %p937_p6 = pneg %p936_p3 }
  0x24   : > { %p942_p10 = pnand %p941_p9, %p937_p6 }
  0x26   : > { %945 = shalt.err (!%p942_p10)
}
  0x27   : > { %822 = dma.hbm_to_vmem [thread:$0]  (!%p1137_p13), %s198_s23, 256, %s200_s26, %s188_s15, %s1040_s30, %s1040_s30, %s1041_s5  }
  0x28   : > { %s209_s11 = sand.u32 1, %s1037_s18   ;;  %s961_s7 = sshra.s32 %s220_s10, 4  ;;  %s962_s7 = int_to_ptr.hbm [resolvable:$true] %s961_s7 }
  0x29   : > { %s210_s6 = scalar_lea.sflag [#allocation5], %s209_s11  ;;  %s963_s21 = scalar_lea.hbm %s962_s7, 16 }
  0x2a   : > { %p964_p11 = scmp.ne.s32.totalorder %s962_s7, %s963_s21  ;;  %s968_s28 = scalar_lea.hbm %s1243_s1, 96 }
  0x2b   : > { %p969_p3 = scmp.lt.s32.totalorder %s962_s7, %s1243_s1  ;;  %p970_p6 = scmp.lt.s32.totalorder %s968_s28, %s963_s21 }
  0x2c   : > { %p966_p12 = pnand %p964_p11, %p935_p2 }
  0x2d   : > { %p971_p7 = por %p970_p6, %p969_p3 }
  0x2e   : > { %p967_p0 = pneg %p966_p12 }
  0x30   : > { %p972_p8 = pnand %p971_p7, %p967_p0 }
  0x32   : > { %975 = shalt.err (!%p972_p8)
}
  0x33   : > { %825 = dma.hbm_to_vmem [thread:$0]  (!%p1137_p13), %s220_s10, 256, %s222_s9, %s210_s6, %s1040_s30, %s1040_s30, %s1041_s5  }
  0x34   : > { %233 = sbr.rel (%p1102_p5) target bundleno = 577 (0x241), region = 36  ;;  %s235_s18 = sand.u32 (!%p1102_p5), 1, %s1029_s16  }
  0x35   : > { %s1181_s23 = sshll.u32 (!%p1102_p5), %s235_s18, 4  ;;  %s236_s26 = scalar_lea.sflag (!%p1102_p5), [#allocation3], %s235_s18 }
  0x36   : > { %s239_s15 = scalar_lea.vmem (!%p1102_p5), [#allocation2], %s1181_s23 }
  0x39   : > { %1008 = dma.done.wait (%p1095_p4), %s236_s26, 256  }
  0x3a   : > { %1010 = vsyncadd (%p1095_p4), %s236_s26, 4294967040  ;;  %s245_s30 = sand.u32 1, %s1087_s19   ;;  %s249_s24 = scalar_lea.vmem [#allocation4], %s1181_s23 }
  0x3b   : > { %s246_s5 = scalar_lea.sflag [#allocation5], %s245_s30 }
  0x3c   : > { %1012 = dma.done.wait (%p1095_p4), %s246_s5, 256  }
  0x3d   : > { %1014 = vsyncadd (%p1095_p4), %s246_s5, 4294967040 }
  0x3e   : > { %1016 = dma.done.wait (%p42_p1), [#allocation5], 256  }
  0x3f   : > { %1018 = vsyncadd (%p42_p1), [#allocation5], 4294967040 }
  0x40   : > { %1020 = dma.done.wait (%p42_p1), [#allocation8], 256  }
  0x41   : > { %1022 = vsyncadd (%p42_p1), [#allocation8], 4294967040  ;;  %v292_v0 = vld [vmem:[%s239_s15 + $0x8] sm:$0xff]  ;;  %v291_v1 = vld [vmem:[%s239_s15] sm:$0xff]  ;;  %vm299_vm0 = vcmask 130048   ;;  %p288_p1 = scmp.lt.s32.totalorder %s1087_s19, 5 }
  0x42   : > { %320 = vmatpush.msra.mxu0 %v292_v0  ;;  %794 = vmatpush.msra.mxu2 %v292_v0  ;;  %v295_v2 = vld [vmem:[#allocation6] sm:$0xff]  ;;  %v296_v3 = vld [vmem:[#allocation6 + $0x8] sm:$0xff]  ;;  %v411_v4 = vmul.f32 %v292_v0, %v292_v0  ;;  %v410_v6 = vmul.f32 %v291_v1, %v291_v1  ;;  %v298_v10 = vld [vmem:[#allocation7 + $0x8] sm:$0xff]  ;;  %vm651_vm9 = vcmask 0  }
  0x43   : > { %v294_v5 = vld [vmem:[%s249_s24 + $0x8] sm:$0xff]  ;;  %v293_v9 = vld [vmem:[%s249_s24] sm:$0xff]  ;;  %349 = vmatpush.msra.mxu1 %v298_v10  ;;  %796 = vmatpush.msra.mxu3 %v298_v10  ;;  %s1255_s19 = smov (!%p288_p1, %s1087_s19), 5 }
  0x44   : > { %321 = vmatpush.msra.mxu0 %v291_v1  ;;  %795 = vmatpush.msra.mxu2 %v291_v1  ;;  %v469_v7 = vmul.f32 %v294_v5, %v294_v5  ;;  %v527_v8 = vmul.f32 %v294_v5, %v292_v0  ;;  %v468_v11 = vmul.f32 %v293_v9, %v293_v9  ;;  %v297_v13 = vld [vmem:[#allocation7] sm:$0xff]  ;;  %s290_s9 = scalar_lea.vmem %s1246_s4, %s1255_s19 }
  0x45   : > { %770 = vmatmul.msk.f32.vlgmr.msra.gmra.mxu0 %vm299_vm0, %v295_v2  ;;  %771 = vmatmul.msk.f32.vlgmr.msra.gmra.mxu2 %vm299_vm0, %v296_v3  ;;  %v526_v12 = vmul.f32 %v293_v9, %v291_v1 }
  0x46   : > { %372 = vmatpush.msrb.mxu2 %v294_v5  ;;  %426 = vmatpush.msrb.mxu0 %v411_v4 }
  0x47   : > { %350 = vmatpush.msra.mxu1 %v297_v13  ;;  %797 = vmatpush.msra.mxu3 %v297_v13 }
  0x48   : > { %373 = vmatpush.msrb.mxu2 %v293_v9  ;;  %427 = vmatpush.msrb.mxu0 %v410_v6 }
  0x49   : > { %455 = vmatpush.msrb.mxu1 %v298_v10  ;;  %401 = vmatpush.msrb.mxu3 %v298_v10 }
  0x4a   : > { %484 = vmatpush.msra.mxu2 %v469_v7  ;;  %542 = vmatpush.msra.mxu0 %v527_v8 }
  0x4b   : > { %456 = vmatpush.msrb.mxu1 %v297_v13  ;;  %402 = vmatpush.msrb.mxu3 %v297_v13 }
  0x4c   : > { %485 = vmatpush.msra.mxu2 %v468_v11  ;;  %543 = vmatpush.msra.mxu0 %v526_v12 }
  0x4d   : > { %774 = vmatmul.msk.f32.vlgmr.msrb.gmra.mxu2 %vm299_vm0, %v295_v2  ;;  %778 = vmatmul.msk.f32.vlgmr.msrb.gmra.mxu0 %vm299_vm0, %v295_v2 }
  0x55   : > { %775 = vmatmul.msk.f32.gmra.mxu2 %vm299_vm0, %v296_v3  ;;  %779 = vmatmul.msk.f32.gmra.mxu0 %vm299_vm0, %v296_v3 }
  0x5d   : > { %782 = vmatmul.msk.f32.vlgmr.msra.gmra.mxu2 %vm299_vm0, %v295_v2  ;;  %786 = vmatmul.msk.f32.vlgmr.msra.gmra.mxu0 %vm299_vm0, %v295_v2 }
  0x65   : > { %783 = vmatmul.msk.f32.gmra.mxu2 %vm299_vm0, %v296_v3  ;;  %787 = vmatmul.msk.f32.gmra.mxu0 %vm299_vm0, %v296_v3 }
  0xc2   : > { %v323_v14 = vpop.f32.mrf.mxu0 }
  0xc3   : > { %772 = vmatmul.msk.f32.vlgmr.msra.gmra.mxu1 %vm299_vm0, %v323_v14 }
  0xc4   : > { %571 = vmatpush.msra.mxu1 %v298_v10 }
  0xc6   : > { %572 = vmatpush.msra.mxu1 %v297_v13 }
  0xc8   : > { %v326_v15 = vpop.f32.mrf.mxu2 }
  0xc9   : > { %773 = vmatmul.msk.f32.vlgmr.msra.gmra.mxu3 %vm299_vm0, %v326_v15 }
  0xca   : > { %v429_v16 = vpop.f32.mrf.mxu0  ;;  %513 = vmatpush.msra.mxu3 %v298_v10 }
  0xcb   : > { %780 = vmatmul.msk.f32.vlgmr.msrb.gmra.mxu1 %vm299_vm0, %v429_v16 }
  0xcc   : > { %514 = vmatpush.msra.mxu3 %v297_v13 }
  0xd0   : > { %v375_v17 = vpop.f32.mrf.mxu2 }
  0xd1   : > { %776 = vmatmul.msk.f32.vlgmr.msrb.gmra.mxu3 %vm299_vm0, %v375_v17 }
  0xd2   : > { %v432_v18 = vpop.f32.mrf.mxu0 }
  0xd3   : > { %781 = vmatmul.msk.f32.gmra.mxu1 %vm299_vm0, %v432_v18 }
  0xd8   : > { %v378_v19 = vpop.f32.mrf.mxu2 }
  0xd9   : > { %777 = vmatmul.msk.f32.gmra.mxu3 %vm299_vm0, %v378_v19 }
  0xda   : > { %v545_v20 = vpop.f32.mrf.mxu0 }
  0xdb   : > { %788 = vmatmul.msk.f32.vlgmr.msra.gmra.mxu1 %vm299_vm0, %v545_v20 }
  0xe0   : > { %v487_v21 = vpop.f32.mrf.mxu2 }
  0xe1   : > { %784 = vmatmul.msk.f32.vlgmr.msra.gmra.mxu3 %vm299_vm0, %v487_v21 }
  0xe2   : > { %v548_v22 = vpop.f32.mrf.mxu0 }
  0xe3   : > { %789 = vmatmul.msk.f32.gmra.mxu1 %vm299_vm0, %v548_v22 }
  0xe8   : > { %v490_v23 = vpop.f32.mrf.mxu2 }
  0xe9   : > { %785 = vmatmul.msk.f32.gmra.mxu3 %vm299_vm0, %v490_v23 }
 0x140   : > { %v352_v25 = vpop.f32.mrf.mxu1 }
 0x141   : > { %v464_v29 = vmul.f32 %v352_v25, %v352_v25  ;;  %v584_v60 = vmul.f32 2.0, %v352_v25 }
 0x148   : > { %v458_v27 = vpop.f32.mrf.mxu1 }
 0x149   : > { %v466_v33 = vsub.f32 %v458_v27, %v464_v29 }
 0x14c   : > { %v355_v24 = vpop.f32.mrf.mxu3 }
 0x14d   : > { %v465_v40 = vmul.f32 %v355_v24, %v355_v24  ;;  %v585_v5 = vmul.f32 2.0, %v355_v24 }
 0x150   : > { %v461_v31 = vpop.f32.mrf.mxu1 }
 0x151   : > { %v467_v44 = vsub.f32 %v461_v31, %v465_v40 }
 0x154   : > { %v404_v26 = vpop.f32.mrf.mxu3 }
 0x155   : > { %v522_v30 = vmul.f32 %v404_v26, %v404_v26  ;;  %v580_v54 = vmul.f32 %v404_v26, %v352_v25  ;;  %v586_v2 = vmul.f32 %v584_v60, %v404_v26 }
 0x157   : > { %v596_v35 = vadd.f32 %v522_v30, %v464_v29  ;;  %v588_v12 = vadd.f32 0.0001, %v586_v2 }
 0x158   : > { %v574_v42 = vpop.f32.mrf.mxu1 }
 0x159   : > { %v598_v37 = vadd.f32 0.0001, %v596_v35  ;;  %v582_v58 = vsub.f32 %v574_v42, %v580_v54 }
 0x15b   : > { %v590_v63 = vmul.f32 2.0, %v582_v58 }
 0x15c   : > { %v407_v28 = vpop.f32.mrf.mxu3 }
 0x15d   : > { %v523_v39 = vmul.f32 %v407_v28, %v407_v28  ;;  %v581_v57 = vmul.f32 %v407_v28, %v355_v24  ;;  %v592_v8 = vadd.f32 0.0009, %v590_v63  ;;  %v587_v9 = vmul.f32 %v585_v5, %v407_v28 }
 0x15f   : > { %v597_v47 = vadd.f32 %v523_v39, %v465_v40  ;;  %v594_v19 = vmul.f32 %v592_v8, %v588_v12  ;;  %v589_v20 = vadd.f32 0.0001, %v587_v9 }
 0x160   : > { %v577_v55 = vpop.f32.mrf.mxu1 }
 0x161   : > { %v599_v49 = vadd.f32 0.0001, %v597_v47  ;;  %v583_v61 = vsub.f32 %v577_v55, %v581_v57 }
 0x163   : > { %v591_v3 = vmul.f32 2.0, %v583_v61 }
 0x164   : > { %v516_v32 = vpop.f32.mrf.mxu3 }
 0x165   : > { %v524_v34 = vsub.f32 %v516_v32, %v522_v30  ;;  %v593_v13 = vadd.f32 0.0009, %v591_v3 }
 0x167   : > { %v600_v36 = vadd.f32 %v524_v34, %v466_v33  ;;  %v595_v23 = vmul.f32 %v593_v13, %v589_v20 }
 0x169   : > { %v602_v38 = vadd.f32 0.0009, %v600_v36 }
 0x16b   : > { %v604_v41 = vmul.f32 %v602_v38, %v598_v37 }
 0x16c   : > { %v519_v43 = vpop.f32.mrf.mxu3 }
 0x16d   : > { %v606_v45 = vadd.f32 1e-12, %v604_v41  ;;  %v525_v46 = vsub.f32 %v519_v43, %v523_v39 }
 0x16f   : > { %867 = vrcp.f32 %v606_v45  ;;  %v601_v48 = vadd.f32 %v525_v46, %v467_v44  ;;  %v619_v4 = vand.u32 2147483648, %v606_v45  ;;  %vm613_vm2 = vweird.f32 %v606_v45 }
 0x170   : > { %v617_v6 = vand.u32 2147483647, %v606_v45 }
 0x171   : > { %v603_v50 = vadd.f32 0.0009, %v601_v48  ;;  %v620_v14 = vor.u32 1.1754944e-38, %v619_v4 }
 0x172   : > { %vm618_vm4 = vcmp.eq.f32.partialorder %v617_v6, 8.507059e+37 }
 0x173   : > { %v605_v51 = vmul.f32 %v603_v50, %v599_v49 }
 0x175   : > { %v868_v52 = vpop.eup %867  ;;  %v607_v53 = vadd.f32 1e-12, %v605_v51 }
 0x176   : > { %v609_v56 = vmul.f32 %v868_v52, %v606_v45  ;;  %vm614_vm1 = vweird.f32 %v868_v52 }
 0x177   : > { %869 = vrcp.f32 %v607_v53  ;;  %vm615_vm3 = vmor %vm613_vm2, %vm614_vm1  ;;  %v634_v15 = vand.u32 2147483648, %v607_v53  ;;  %v632_v17 = vand.u32 2147483647, %v607_v53  ;;  %vm628_vm6 = vweird.f32 %v607_v53 }
 0x178   : > { %v610_v59 = vsub.f32 1.0, %v609_v56 }
 0x179   : > { %v635_v22 = vor.u32 1.1754944e-38, %v634_v15  ;;  %vm633_vm8 = vcmp.eq.f32.partialorder %v632_v17, 8.507059e+37 }
 0x17a   : > { %v611_v62 = vmul.f32 %v868_v52, %v610_v59 }
 0x17c   : > { %v612_v0 = vadd.f32 %v868_v52, %v611_v62 }
 0x17d   : > { %v870_v1 = vpop.eup %869 }
 0x17e   : > { %v624_v7 = vmul.f32 %v870_v1, %v607_v53  ;;  %v616_v10 = vsel %vm615_vm3, %v868_v52, %v612_v0  ;;  %vm629_vm5 = vweird.f32 %v870_v1 }
 0x17f   : > { %v621_v18 = vsel %vm618_vm4, %v620_v14, %v616_v10  ;;  %vm630_vm7 = vmor %vm628_vm6, %vm629_vm5 }
 0x180   : > { %v625_v11 = vsub.f32 1.0, %v624_v7  ;;  %v622_v24 = vmul.f32 %v621_v18, %v594_v19 }
 0x182   : > { %v626_v16 = vmul.f32 %v870_v1, %v625_v11  ;;  %v638_v28 = vsel %vm299_vm0, %v622_v24, 0.0 }
 0x184   : > { %v627_v21 = vadd.f32 %v870_v1, %v626_v16 }
 0x186   : > { %v631_v25 = vsel %vm630_vm7, %v870_v1, %v627_v21 }
 0x187   : > { %v636_v26 = vsel %vm633_vm8, %v635_v22, %v631_v25 }
 0x188   : > { %v637_v27 = vmul.f32 %v636_v26, %v595_v23 }
 0x18a   : > { %v639_v29 = vsel %vm299_vm0, %v637_v27, 0.0 }
 0x18b   : > { %v640_v30 = vadd.f32 %v639_v29, %v638_v28 }
 0x18d   : > { %641 = vadd.xlane.f32.xlu0 %v640_v30 }
 0x200   : > { %v642_v31 = vpop.xlane.xlu0 %641 }
 0x201   : > { %v643_v32 = vrot.slane %v642_v31, 4 }
 0x203   : > { %v644_v33 = vadd.f32 %v643_v32, %v642_v31 }
 0x205   : > { %v645_v34 = vrot.slane %v644_v33, 2 }
 0x207   : > { %v646_v35 = vadd.f32 %v645_v34, %v644_v33 }
 0x209   : > { %v647_v36 = vrot.slane %v646_v35, 1 }
 0x20b   : > { %v648_v37 = vadd.f32 %v647_v36, %v646_v35 }
 0x20d   : > { %798 = vpush %v648_v37 }
 0x23e   : > { %s799_s10 = spop %798 }
 0x23f   : > { %v650_v38 = vstv %s799_s10 }
 0x240   : > { %652 = vst.msk [vmem:[%s290_s9] sm:$0x1] %vm651_vm9, %v650_v38 }
 0x241 PF: > { %p18_p4 = scmp.ge.s32.totalorder %s1120_s8, 8   ;;  %s1250_s15 = smov %s1029_s16 }
 0x242   : > { %s1251_s16 = smov %s1033_s17  ;;  %s1252_s17 = smov %s1131_s12 }
 0x243   : > { %s1253_s18 = smov %s1120_s8  ;;  %20 = sbr.rel (!%p18_p4) target bundleno = 6 (0x6), region = 97 }
 0x248   :  { %670 = vsyncpa [#allocation3], 1 }
 0x249   :  { %672 = vsyncpa [#allocation3 + $0x1], 1 }
 0x24a   :  { %673 = vsyncpa [#allocation5], 1 }
 0x24b   :  { %675 = vsyncpa [#allocation5 + $0x1], 1 }
 0x24c   :  { %676 = vsyncpa [#allocation8], 1 }

</bundles_post_ra>
